<compile_context>
chip_gen: v7x
topology: tpu7x:2x2x1
jax: 0.10.0
libtpu: 0.0.40
codegen_flags: <defaults>
</compile_context>

<pallas_src>
import math

import jax
import jax.numpy as jnp
from jax import lax
from jax.experimental import pallas as pl
from jax.experimental.pallas import tpu as pltpu


def _vmem_capacity_bytes():
    """Best-effort VMEM capacity query (v7x: 64 MiB, v5e/v6e: 128 MiB)."""
    try:
        return int(pltpu.get_tpu_info().vmem_capacity_bytes)
    except Exception:
        return 64 * 1024 * 1024  # conservative (v7x) fallback


def _pick_kv_chunk(B, D, itemsize, vmem_cap):
    """Largest KV chunk whose double-buffered K+V stream fits in ~half of VMEM."""
    budget = vmem_cap // 2
    per_row = 4 * B * D * itemsize          # K + V, double-buffered
    tkv = budget // max(per_row, 1)
    tkv = (tkv // 128) * 128
    return int(max(128, min(tkv, 2048)))


def _make_kernel(B, D, H, tkv, t_valid, num_chunks, need_mask):
    """Flash-decoding attention over a projected KV cache, chunked along KV."""

    def kernel(qh_ref, kp_ref, vp_ref, hsumt_ref, wo_ref, bo_ref, o_ref,
               m_sc, l_sc, acc_sc):
        c = pl.program_id(0)

        @pl.when(c == 0)
        def _init():
            m_sc[...] = jnp.full((B, H), -jnp.inf, dtype=jnp.float32)
            l_sc[...] = jnp.zeros((B, H), dtype=jnp.float32)
            acc_sc[...] = jnp.zeros((B, H, D), dtype=jnp.float32)

        kp = kp_ref[...]                      # (B, tkv, D)  kv dtype
        vp = vp_ref[...]                      # (B, tkv, D)  kv dtype
        qh = qh_ref[...]                      # (B, H, D)    kv dtype (scale + head mask folded)

        # Per-head scores in a lane-dense layout (KV positions in the 128-lane dim):
        #   s[b, h, t] = sum_d qh[b, h, d] * kp[b, t, d]
        s = jnp.einsum("bhd,btd->bht", qh, kp,
                       preferred_element_type=jnp.float32)            # (B, H, tkv) f32

        if need_mask:  # static: only traced when T is not a multiple of tkv
            lane_pos = c * tkv + lax.broadcasted_iota(jnp.int32, (B, H, tkv), 2)
            s = jnp.where(lane_pos < t_valid, s, -jnp.inf)
            # zero the out-of-range V rows so 0 * garbage cannot poison the context sum
            sub_pos = c * tkv + lax.broadcasted_iota(jnp.int32, (B, tkv, 1), 1)
            vp = jnp.where(sub_pos < t_valid, vp, jnp.zeros_like(vp))

        # Online softmax over the KV axis (last / lane dim).
        m_prev = m_sc[...]
        m_new = jnp.maximum(m_prev, jnp.max(s, axis=-1))               # (B, H)
        alpha = jnp.exp(m_prev - m_new)                                # (B, H)
        p = jnp.exp(s - m_new[:, :, None])                             # (B, H, tkv) f32
        l_sc[...] = alpha * l_sc[...] + jnp.sum(p, axis=-1)
        m_sc[...] = m_new

        # Per-head context on the MXU: ctx_h[b, h, d] = sum_t p[b, h, t] * vp[b, t, d]
        ctx_h = jnp.einsum("bht,btd->bhd", p.astype(vp.dtype), vp,
                           preferred_element_type=jnp.float32)         # (B, H, D) f32
        acc_sc[...] = alpha[:, :, None] * acc_sc[...] + ctx_h

        @pl.when(c == num_chunks - 1)
        def _finalize():
            acc_n = acc_sc[...] / l_sc[...][:, :, None]                # (B, H, D)
            # head -> channel extraction (each channel belongs to exactly one head)
            ctx = jnp.sum(acc_n * hsumt_ref[...][None, :, :], axis=1)  # (B, D) f32
            out = jnp.dot(ctx.astype(wo_ref.dtype), wo_ref[...],
                          preferred_element_type=jnp.float32) + bo_ref[...]
            o_ref[...] = out.astype(o_ref.dtype)                       # lane-dense (B, D)

    return kernel


def prepare_params(params, dtype=jnp.bfloat16):
    """One-time parameter preparation (hoisted out of the per-token decode step)."""
    nhead = int(params["nhead"])
    D = params["out_proj_weight"].shape[0]
    hd = D // nhead
    scale = 1.0 / math.sqrt(hd)

    wq, wk, wv = jnp.split(params["in_proj_weight"], 3, axis=0)
    bq, bk, bv = jnp.split(params["in_proj_bias"], 3, axis=0)
    del bk  # exact: a per-(b, h) constant score shift cancels in softmax

    wo_t = params["out_proj_weight"].T.astype(jnp.float32)             # x @ wo_t == x @ Wo^T
    # exact: softmax weights sum to 1, so the V bias can be folded through Wo into bo
    bo_eff = (params["out_proj_bias"] + bv @ wo_t).reshape(1, D)

    head_of = jnp.arange(D, dtype=jnp.int32) // hd
    hsum_t = (jnp.arange(nhead, dtype=jnp.int32)[:, None]
              == head_of[None, :]).astype(jnp.float32)                 # (H, D) head mask

    return {
        "nhead": nhead,
        "d_model": D,
        "dtype": dtype,
        "wq_t": (wq.T * scale).astype(jnp.float32),   # 1/sqrt(hd) folded into Q projection
        "bq": (bq * scale).reshape(1, D).astype(jnp.float32),
        "wk_t": wk.T.astype(jnp.float32),             # wrapper-side projected-cache update
        "wv_t": wv.T.astype(jnp.float32),
        "wo_t": wo_t.astype(dtype),                   # kernel-side output projection
        "bo_eff": bo_eff.astype(jnp.float32),
        "hsum_t": hsum_t,                             # (H, D) f32
    }


def incremental_self_attention(prepared, query, key, value,
                               past_key=None, past_value=None,
                               past_key_proj=None, past_value_proj=None,
                               kv_chunk=None, return_projected_kv=False):
    """JAX/Pallas equivalent of IncrementalSelfAttention.forward.

    Returns (output, comb_key, comb_value) like the PyTorch module; with
    return_projected_kv=True it additionally returns the projected K/V caches so the
    next decode step only has to project the new token (O(D^2) per step).
    """
    B, Tq, D = query.shape
    assert Tq == 1, "incremental decode expects a single new query token"
    H = prepared["nhead"]
    cdt = prepared["dtype"]

    # Raw concatenated K/V (module interface).
    # TODO(synk): at a fixed max context, replace with a preallocated (B, T_max, D)
    # cache updated via lax.dynamic_update_slice + input_output_aliases to avoid the
    # O(B*T*D) copy; kept because the module returns the growing raw K/V each step.
    if past_key is not None and past_value is not None:
        comb_key = jnp.concatenate([past_key, key], axis=1)
        comb_value = jnp.concatenate([past_value, value], axis=1)
    else:
        comb_key, comb_value = key, value
    T = comb_key.shape[1]

    # Projected KV cache: project only the new token when a projected past is supplied.
    kp_new = (key[:, 0, :] @ prepared["wk_t"]).astype(cdt)[:, None, :]
    vp_new = (value[:, 0, :] @ prepared["wv_t"]).astype(cdt)[:, None, :]
    if past_key_proj is not None and past_value_proj is not None:
        key_proj = jnp.concatenate([past_key_proj, kp_new], axis=1)
        value_proj = jnp.concatenate([past_value_proj, vp_new], axis=1)
    elif past_key is not None and past_value is not None:
        key_proj = jnp.concatenate(
            [(past_key @ prepared["wk_t"]).astype(cdt), kp_new], axis=1)
        value_proj = jnp.concatenate(
            [(past_value @ prepared["wv_t"]).astype(cdt), vp_new], axis=1)
    else:
        key_proj, value_proj = kp_new, vp_new

    # Scaled, head-masked query: qh[b, h, d] = (q @ Wq^T + bq)[b, d] * scale * 1{d in head h}
    qp = query[:, 0, :] @ prepared["wq_t"] + prepared["bq"]            # (B, D) f32
    qh = (qp[:, None, :] * prepared["hsum_t"][None, :, :]).astype(cdt)  # (B, H, D)

    # ---- KV chunking along a single "arbitrary" grid axis (flash-decoding) ----
    itemsize = jnp.dtype(cdt).itemsize
    vmem_cap = _vmem_capacity_bytes()
    if kv_chunk is not None:
        tkv = int(kv_chunk)
        tkv = T if tkv >= T else max(16, (tkv // 16) * 16)
    else:
        tkv_cap = _pick_kv_chunk(B, D, itemsize, vmem_cap)
        tkv = T if T <= tkv_cap else tkv_cap
    num_chunks = int(pl.cdiv(T, tkv))
    need_mask = (num_chunks * tkv != T)

    # VMEM budget: double-buffered KV chunks + (possibly double-buffered) constants
    # + accumulators / intermediates + headroom.
    kv_bytes = 4 * B * tkv * D * itemsize
    const_bytes = 2 * (B * H * D + D * D + D) * itemsize + 2 * H * D * 4
    scratch_bytes = (B * H * D + 2 * B * H + 2 * B * D) * 4
    inter_bytes = 6 * B * tkv * H * 4 + 2 * B * H * D * 4
    est = kv_bytes + const_bytes + scratch_bytes + inter_bytes + (4 << 20)
    vmem_limit = int(min(max(est, 16 << 20), vmem_cap))

    kernel_fn = _make_kernel(B, D, H, tkv, T, num_chunks, need_mask)
    kv_map = lambda c: (0, c, 0)

    def _build_call(single_buffer_consts):
        def const_spec(shape):
            idx = lambda c: (0,) * len(shape)
            if single_buffer_consts:
                return pl.BlockSpec(shape, idx, pipeline_mode=pl.Buffered(1))
            return pl.BlockSpec(shape, idx)

        return pl.pallas_call(
            kernel_fn,
            out_shape=jax.ShapeDtypeStruct((B, D), query.dtype),
            grid_spec=pltpu.PrefetchScalarGridSpec(
                num_scalar_prefetch=0,
                grid=(num_chunks,),
                in_specs=[
                    const_spec((B, H, D)),                   # qh (scaled, head-masked query)
                    pl.BlockSpec((B, tkv, D), kv_map),       # projected K chunk
                    pl.BlockSpec((B, tkv, D), kv_map),       # projected V chunk
                    const_spec((H, D)),                      # head->channel mask
                    const_spec((D, D)),                      # Wo^T
                    const_spec((1, D)),                      # bo + bv @ Wo^T
                ],
                out_specs=pl.BlockSpec((B, D), lambda c: (0, 0)),
                scratch_shapes=[
                    pltpu.VMEM((B, H), jnp.float32),         # running max
                    pltpu.VMEM((B, H), jnp.float32),         # running denominator
                    pltpu.VMEM((B, H, D), jnp.float32),      # running numerator (per head)
                ],
            ),
            compiler_params=pltpu.CompilerParams(
                dimension_semantics=("arbitrary",),
                vmem_limit_bytes=vmem_limit),
        )

    args = (qh, key_proj, value_proj,
            prepared["hsum_t"], prepared["wo_t"], prepared["bo_eff"])
    try:
        out2d = _build_call(True)(*args)
    except Exception:
        # Fallback if single-buffered constants (pl.Buffered(1)) are unsupported.
        out2d = _build_call(False)(*args)

    out = out2d.reshape(B, 1, D)
    if return_projected_kv:
        return out, comb_key, comb_value, key_proj, value_proj
    return out, comb_key, comb_value


def _reference_mha(params, query, comb_key, comb_value):
    """Pure-JAX reference matching nn.MultiheadAttention(batch_first=True) forward."""
    D = query.shape[-1]
    nhead = params["nhead"]
    hd = D // nhead
    wq, wk, wv = jnp.split(params["in_proj_weight"], 3, axis=0)
    bq, bk, bv = jnp.split(params["in_proj_bias"], 3, axis=0)
    wo, bo = params["out_proj_weight"], params["out_proj_bias"]

    qp = query @ wq.T + bq
    kp = comb_key @ wk.T + bk
    vp = comb_value @ wv.T + bv

    def heads(x):
        b, t, _ = x.shape
        return x.reshape(b, t, nhead, hd).transpose(0, 2, 1, 3)

    qh = heads(qp) / math.sqrt(hd)
    kh = heads(kp)
    vh = heads(vp)
    s = jnp.einsum("bhqd,bhkd->bhqk", qh, kh)
    w = jax.nn.softmax(s, axis=-1)
    o = jnp.einsum("bhqk,bhkd->bhqd", w, vh)
    B, _, Tq, _ = o.shape
    o = o.transpose(0, 2, 1, 3).reshape(B, Tq, D)
    return o @ wo.T + bo


def init_params(key, d_model, nhead):
    k1, k2, k3, k4 = jax.random.split(key, 4)
    lim = math.sqrt(6.0 / (d_model + d_model))
    return {
        "nhead": nhead,
        "in_proj_weight": jax.random.uniform(
            k1, (3 * d_model, d_model), jnp.float32, -lim, lim),
        "in_proj_bias": jax.random.uniform(
            k3, (3 * d_model,), jnp.float32, -0.1, 0.1),
        "out_proj_weight": jax.random.uniform(
            k2, (d_model, d_model), jnp.float32, -lim, lim),
        "out_proj_bias": jax.random.uniform(
            k4, (d_model,), jnp.float32, -0.1, 0.1),
    }


if __name__ == "__main__":
    B, S, D, NHEAD = 2, 8, 32, 4

    root = jax.random.PRNGKey(0)
    k_par, k_q, k_k, k_v, k_pk, k_pv, k_lk, k_lv = jax.random.split(root, 8)
    params = init_params(k_par, D, NHEAD)

    query = jax.random.normal(k_q, (B, 1, D), jnp.float32)
    key = jax.random.normal(k_k, (B, 1, D), jnp.float32)
    value = jax.random.normal(k_v, (B, 1, D), jnp.float32)
    past_key = jax.random.normal(k_pk, (B, S, D), jnp.float32)
    past_value = jax.random.normal(k_pv, (B, S, D), jnp.float32)

    # ---- exact-math checks: f32 KV streaming path ----
    prep32 = prepare_params(params, dtype=jnp.float32)

    out, ck, cv = incremental_self_attention(
        prep32, query, key, value, past_key, past_value)
    jax.block_until_ready((out, ck, cv))
    assert out.shape == (B, 1, D)
    assert ck.shape == (B, S + 1, D) and cv.shape == (B, S + 1, D)
    ref = _reference_mha(params, query, ck, cv)
    assert jnp.allclose(out, ref, atol=2e-5, rtol=2e-5), "mismatch vs reference (with past)"

    # first decode step (no history), keeping the projected KV cache
    out0, k0, v0, k0p, v0p = incremental_self_attention(
        prep32, query, key, value, return_projected_kv=True)
    ref0 = _reference_mha(params, query, k0, v0)
    assert jnp.allclose(out0, ref0, atol=2e-5, rtol=2e-5), "mismatch vs reference (no past)"

    # second decode step reusing the projected KV cache (only the new token projected)
    out1, k1, v1, k1p, v1p = incremental_self_attention(
        prep32, query, key, value, past_key=k0, past_value=v0,
        past_key_proj=k0p, past_value_proj=v0p, return_projected_kv=True)
    ref1 = _reference_mha(params, query, k1, v1)
    assert jnp.allclose(out1, ref1, atol=2e-5, rtol=2e-5), "mismatch vs reference (cached proj)"
    assert k1p.shape == (B, 2, D) and v1p.shape == (B, 2, D)

    # multi-chunk grid + ragged final chunk (in-kernel mask path, no padding copy)
    long_S = 41
    lpk = jax.random.normal(k_lk, (B, long_S, D), jnp.float32)
    lpv = jax.random.normal(k_lv, (B, long_S, D), jnp.float32)
    outL, ckL, cvL = incremental_self_attention(
        prep32, query, key, value, lpk, lpv, kv_chunk=16)
    jax.block_until_ready(outL)
    refL = _reference_mha(params, query, ckL, cvL)
    assert jnp.allclose(outL, refL, atol=2e-5, rtol=2e-5), "mismatch vs reference (chunked)"

    # ---- default bf16 streaming path (looser tolerance vs the f32 reference) ----
    prep16 = prepare_params(params)  # bf16 by default
    outb, ckb, cvb = incremental_self_attention(
        prep16, query, key, value, past_key, past_value)
    jax.block_until_ready(outb)
    refb = _reference_mha(params, query, ckb, cvb)
    rel = float(jnp.linalg.norm(outb - refb) / jnp.linalg.norm(refb))
    assert rel < 0.05, f"bf16 path relative error too large: {rel}"

    print("KERNEL_OK")
</pallas_src>

<mosaic_0001>
module attributes {stable_mosaic.version = 11 : i64} {
  func.func @kernel(%arg0: i32, %arg1: memref<2x4x32xf32, #tpu.memory_space<vmem>>, %arg2: memref<2x9x32xf32, #tpu.memory_space<vmem>>, %arg3: memref<2x9x32xf32, #tpu.memory_space<vmem>>, %arg4: memref<4x32xf32, #tpu.memory_space<vmem>>, %arg5: memref<32x32xf32, #tpu.memory_space<vmem>>, %arg6: memref<1x32xf32, #tpu.memory_space<vmem>>, %arg7: memref<2x32xf32, #tpu.memory_space<vmem>>, %arg8: memref<2x4xf32, #tpu.memory_space<vmem>>, %arg9: memref<2x4xf32, #tpu.memory_space<vmem>>, %arg10: memref<2x4x32xf32, #tpu.memory_space<vmem>>) attributes {dimension_semantics = [#tpu.dimension_semantics<arbitrary>], iteration_bounds = array<i64: 1>, scalar_prefetch = 0 : i64, scratch_operands = 3 : i64, tpu.core_type = #tpu.core_type<tc>, window_params = [{pipeline_mode = #tpu.pipeline_mode<synchronous>, transform_indices = @transform_0, window_bounds = array<i64: 2, 4, 32>}, {transform_indices = @transform_1, window_bounds = array<i64: 2, 9, 32>}, {transform_indices = @transform_2, window_bounds = array<i64: 2, 9, 32>}, {pipeline_mode = #tpu.pipeline_mode<synchronous>, transform_indices = @transform_3, window_bounds = array<i64: 4, 32>}, {pipeline_mode = #tpu.pipeline_mode<synchronous>, transform_indices = @transform_4, window_bounds = array<i64: 32, 32>}, {pipeline_mode = #tpu.pipeline_mode<synchronous>, transform_indices = @transform_5, window_bounds = array<i64: 1, 32>}, {pipeline_mode = #tpu.pipeline_mode<synchronous>, transform_indices = @transform_6, window_bounds = array<i64: 2, 32>}]} {
    %c0_i32 = arith.constant 0 : i32
    %0 = arith.cmpi eq, %arg0, %c0_i32 : i32
    %1 = arith.extui %0 : i1 to i32
    %c0_i32_0 = arith.constant 0 : i32
    %2 = arith.cmpi ne, %1, %c0_i32_0 : i32
    scf.if %2 {
      %cst_28 = arith.constant 0xFF800000 : f32
      %32 = vector.broadcast %cst_28 : f32 to vector<2x4xf32>
      %c0_29 = arith.constant 0 : index
      %c0_30 = arith.constant 0 : index
      %33 = vector.load %arg8[%c0_29, %c0_30] : memref<2x4xf32, #tpu.memory_space<vmem>>, vector<2x4xf32>
      tpu.vector_store %arg8[%c0_29, %c0_30], %32 {strides = array<i32>} : memref<2x4xf32, #tpu.memory_space<vmem>>, vector<2x4xf32>,
      %cst_31 = arith.constant 0.000000e+00 : f32
      %34 = vector.broadcast %cst_31 : f32 to vector<2x4xf32>
      %c0_32 = arith.constant 0 : index
      %c0_33 = arith.constant 0 : index
      %35 = vector.load %arg9[%c0_32, %c0_33] : memref<2x4xf32, #tpu.memory_space<vmem>>, vector<2x4xf32>
      tpu.vector_store %arg9[%c0_32, %c0_33], %34 {strides = array<i32>} : memref<2x4xf32, #tpu.memory_space<vmem>>, vector<2x4xf32>,
      %cst_34 = arith.constant 0.000000e+00 : f32
      %36 = vector.broadcast %cst_34 : f32 to vector<2x4x32xf32>
      %c0_35 = arith.constant 0 : index
      %c0_36 = arith.constant 0 : index
      %c0_37 = arith.constant 0 : index
      %37 = vector.load %arg10[%c0_35, %c0_36, %c0_37] : memref<2x4x32xf32, #tpu.memory_space<vmem>>, vector<2x4x32xf32>
      tpu.vector_store %arg10[%c0_35, %c0_36, %c0_37], %36 {strides = array<i32>} : memref<2x4x32xf32, #tpu.memory_space<vmem>>, vector<2x4x32xf32>,
    } else {
    }
    %c0 = arith.constant 0 : index
    %c0_1 = arith.constant 0 : index
    %c0_2 = arith.constant 0 : index
    %3 = vector.load %arg2[%c0, %c0_1, %c0_2] : memref<2x9x32xf32, #tpu.memory_space<vmem>>, vector<2x9x32xf32>
    %c0_3 = arith.constant 0 : index
    %c0_4 = arith.constant 0 : index
    %c0_5 = arith.constant 0 : index
    %4 = vector.load %arg3[%c0_3, %c0_4, %c0_5] : memref<2x9x32xf32, #tpu.memory_space<vmem>>, vector<2x9x32xf32>
    %c0_6 = arith.constant 0 : index
    %c0_7 = arith.constant 0 : index
    %c0_8 = arith.constant 0 : index
    %5 = vector.load %arg1[%c0_6, %c0_7, %c0_8] : memref<2x4x32xf32, #tpu.memory_space<vmem>>, vector<2x4x32xf32>
    "tpu.trace_start"() <{level = 10 : i32, message = "bhd,btd->bht"}> : () -> ()
    %cst = arith.constant dense<0.000000e+00> : vector<2x4x9xf32>
    %6 = tpu.matmul %5, %3, %cst {dimension_numbers = #tpu.dot_dimension_numbers<[2], [2], [1], [1], [0, 0, 0, 1, 1, 1], [0], [0]>} : vector<2x4x32xf32>, vector<2x9x32xf32>, vector<2x4x9xf32> -> vector<2x4x9xf32>
    "tpu.trace_stop"() : () -> ()
    %c0_9 = arith.constant 0 : index
    %c0_10 = arith.constant 0 : index
    %7 = vector.load %arg8[%c0_9, %c0_10] : memref<2x4xf32, #tpu.memory_space<vmem>>, vector<2x4xf32>
    %cst_11 = arith.constant dense<0xFF800000> : vector<2x4xf32>
    %8 = vector.multi_reduction <maximumf>, %6, %cst_11 [2] : vector<2x4x9xf32> to vector<2x4xf32>
    %9 = arith.maximumf %7, %8 : vector<2x4xf32>
    %10 = arith.subf %7, %9 : vector<2x4xf32>
    %11 = math.exp %10 : vector<2x4xf32>
    %12 = vector.shape_cast %9 : vector<2x4xf32> to vector<2x4x1xf32>
    %13 = vector.broadcast %12 : vector<2x4x1xf32> to vector<2x4x9xf32>
    %14 = arith.subf %6, %13 : vector<2x4x9xf32>
    %15 = math.exp %14 : vector<2x4x9xf32>
    %c0_12 = arith.constant 0 : index
    %c0_13 = arith.constant 0 : index
    %16 = vector.load %arg9[%c0_12, %c0_13] : memref<2x4xf32, #tpu.memory_space<vmem>>, vector<2x4xf32>
    %17 = arith.mulf %11, %16 : vector<2x4xf32>
    %cst_14 = arith.constant dense<0.000000e+00> : vector<2x4xf32>
    %18 = vector.multi_reduction <add>, %15, %cst_14 [2] : vector<2x4x9xf32> to vector<2x4xf32>
    %19 = arith.addf %17, %18 : vector<2x4xf32>
    %c0_15 = arith.constant 0 : index
    %c0_16 = arith.constant 0 : index
    %20 = vector.load %arg9[%c0_15, %c0_16] : memref<2x4xf32, #tpu.memory_space<vmem>>, vector<2x4xf32>
    tpu.vector_store %arg9[%c0_15, %c0_16], %19 {strides = array<i32>} : memref<2x4xf32, #tpu.memory_space<vmem>>, vector<2x4xf32>,
    %c0_17 = arith.constant 0 : index
    %c0_18 = arith.constant 0 : index
    %21 = vector.load %arg8[%c0_17, %c0_18] : memref<2x4xf32, #tpu.memory_space<vmem>>, vector<2x4xf32>
    tpu.vector_store %arg8[%c0_17, %c0_18], %9 {strides = array<i32>} : memref<2x4xf32, #tpu.memory_space<vmem>>, vector<2x4xf32>,
    "tpu.trace_start"() <{level = 10 : i32, message = "bht,btd->bhd"}> : () -> ()
    %cst_19 = arith.constant dense<0.000000e+00> : vector<2x4x32xf32>
    %22 = tpu.matmul %15, %4, %cst_19 {dimension_numbers = #tpu.dot_dimension_numbers<[2], [1], [1], [2], [0, 0, 0, 1, 1, 2], [0], [0]>} : vector<2x4x9xf32>, vector<2x9x32xf32>, vector<2x4x32xf32> -> vector<2x4x32xf32>
    "tpu.trace_stop"() : () -> ()
    %23 = vector.shape_cast %11 : vector<2x4xf32> to vector<2x4x1xf32>
    %c0_20 = arith.constant 0 : index
    %c0_21 = arith.constant 0 : index
    %c0_22 = arith.constant 0 : index
    %24 = vector.load %arg10[%c0_20, %c0_21, %c0_22] : memref<2x4x32xf32, #tpu.memory_space<vmem>>, vector<2x4x32xf32>
    %25 = vector.broadcast %23 : vector<2x4x1xf32> to vector<2x4x32xf32>
    %26 = arith.mulf %25, %24 : vector<2x4x32xf32>
    %27 = arith.addf %26, %22 : vector<2x4x32xf32>
    %c0_23 = arith.constant 0 : index
    %c0_24 = arith.constant 0 : index
    %c0_25 = arith.constant 0 : index
    %28 = vector.load %arg10[%c0_23, %c0_24, %c0_25] : memref<2x4x32xf32, #tpu.memory_space<vmem>>, vector<2x4x32xf32>
    tpu.vector_store %arg10[%c0_23, %c0_24, %c0_25], %27 {strides = array<i32>} : memref<2x4x32xf32, #tpu.memory_space<vmem>>, vector<2x4x32xf32>,
    %c0_i32_26 = arith.constant 0 : i32
    %29 = arith.cmpi eq, %arg0, %c0_i32_26 : i32
    %30 = arith.extui %29 : i1 to i32
    %c0_i32_27 = arith.constant 0 : i32
    %31 = arith.cmpi ne, %30, %c0_i32_27 : i32
    scf.if %31 {
      %c0_28 = arith.constant 0 : index
      %c0_29 = arith.constant 0 : index
      %c0_30 = arith.constant 0 : index
      %32 = vector.load %arg10[%c0_28, %c0_29, %c0_30] : memref<2x4x32xf32, #tpu.memory_space<vmem>>, vector<2x4x32xf32>
      %c0_31 = arith.constant 0 : index
      %c0_32 = arith.constant 0 : index
      %33 = vector.load %arg9[%c0_31, %c0_32] : memref<2x4xf32, #tpu.memory_space<vmem>>, vector<2x4xf32>
      %34 = vector.shape_cast %33 : vector<2x4xf32> to vector<2x4x1xf32>
      %35 = vector.broadcast %34 : vector<2x4x1xf32> to vector<2x4x32xf32>
      %36 = arith.divf %32, %35 : vector<2x4x32xf32>
      %c0_33 = arith.constant 0 : index
      %c0_34 = arith.constant 0 : index
      %37 = vector.load %arg4[%c0_33, %c0_34] : memref<4x32xf32, #tpu.memory_space<vmem>>, vector<4x32xf32>
      %38 = vector.shape_cast %37 : vector<4x32xf32> to vector<1x4x32xf32>
      %39 = vector.broadcast %38 : vector<1x4x32xf32> to vector<2x4x32xf32>
      %40 = arith.mulf %36, %39 : vector<2x4x32xf32>
      %cst_35 = arith.constant dense<0.000000e+00> : vector<2x32xf32>
      %41 = vector.multi_reduction <add>, %40, %cst_35 [1] : vector<2x4x32xf32> to vector<2x32xf32>
      %c0_36 = arith.constant 0 : index
      %c0_37 = arith.constant 0 : index
      %42 = vector.load %arg5[%c0_36, %c0_37] : memref<32x32xf32, #tpu.memory_space<vmem>>, vector<32x32xf32>
      %cst_38 = arith.constant dense<0.000000e+00> : vector<2x32xf32>
      %43 = tpu.matmul %41, %42, %cst_38 {dimension_numbers = #tpu.dot_dimension_numbers<[1], [0], [0], [1], [0, 0, 1, 1], [], []>} : vector<2x32xf32>, vector<32x32xf32>, vector<2x32xf32> -> vector<2x32xf32>
      %c0_39 = arith.constant 0 : index
      %c0_40 = arith.constant 0 : index
      %44 = vector.load %arg6[%c0_39, %c0_40] : memref<1x32xf32, #tpu.memory_space<vmem>>, vector<1x32xf32>
      %45 = vector.broadcast %44 : vector<1x32xf32> to vector<2x32xf32>
      %46 = arith.addf %43, %45 : vector<2x32xf32>
      %c0_41 = arith.constant 0 : index
      %c0_42 = arith.constant 0 : index
      %47 = vector.load %arg7[%c0_41, %c0_42] : memref<2x32xf32, #tpu.memory_space<vmem>>, vector<2x32xf32>
      tpu.vector_store %arg7[%c0_41, %c0_42], %46 {strides = array<i32>} : memref<2x32xf32, #tpu.memory_space<vmem>>, vector<2x32xf32>,
    } else {
    }
    return
  }
  func.func @transform_0(%arg0: i32) -> (i32, i32, i32) {
    %c0_i32 = arith.constant 0 : i32
    %c0_i32_0 = arith.constant 0 : i32
    %c0_i32_1 = arith.constant 0 : i32
    %c0_i32_2 = arith.constant 0 : i32
    return %c0_i32, %c0_i32_0, %c0_i32_1 : i32, i32, i32
  }
  func.func @transform_1(%arg0: i32) -> (i32, i32, i32) {
    %c0_i32 = arith.constant 0 : i32
    %c0_i32_0 = arith.constant 0 : i32
    %c0_i32_1 = arith.constant 0 : i32
    return %c0_i32, %arg0, %c0_i32_0 : i32, i32, i32
  }
  func.func @transform_2(%arg0: i32) -> (i32, i32, i32) {
    %c0_i32 = arith.constant 0 : i32
    %c0_i32_0 = arith.constant 0 : i32
    %c0_i32_1 = arith.constant 0 : i32
    return %c0_i32, %arg0, %c0_i32_0 : i32, i32, i32
  }
  func.func @transform_3(%arg0: i32) -> (i32, i32) {
    %c0_i32 = arith.constant 0 : i32
    %c0_i32_0 = arith.constant 0 : i32
    %c0_i32_1 = arith.constant 0 : i32
    return %c0_i32, %c0_i32_0 : i32, i32
  }
  func.func @transform_4(%arg0: i32) -> (i32, i32) {
    %c0_i32 = arith.constant 0 : i32
    %c0_i32_0 = arith.constant 0 : i32
    %c0_i32_1 = arith.constant 0 : i32
    return %c0_i32, %c0_i32_0 : i32, i32
  }
  func.func @transform_5(%arg0: i32) -> (i32, i32) {
    %c0_i32 = arith.constant 0 : i32
    %c0_i32_0 = arith.constant 0 : i32
    %c0_i32_1 = arith.constant 0 : i32
    return %c0_i32, %c0_i32_0 : i32, i32
  }
  func.func @transform_6(%arg0: i32) -> (i32, i32) {
    %c0_i32 = arith.constant 0 : i32
    %c0_i32_0 = arith.constant 0 : i32
    %c0_i32_1 = arith.constant 0 : i32
    return %c0_i32, %c0_i32_0 : i32, i32
  }
}

module attributes {stable_mosaic.version = 11 : i64} {
  func.func @kernel(%arg0: i32, %arg1: memref<2x4x32xf32, #tpu.memory_space<vmem>>, %arg2: memref<2x9x32xf32, #tpu.memory_space<vmem>>, %arg3: memref<2x9x32xf32, #tpu.memory_space<vmem>>, %arg4: memref<4x32xf32, #tpu.memory_space<vmem>>, %arg5: memref<32x32xf32, #tpu.memory_space<vmem>>, %arg6: memref<1x32xf32, #tpu.memory_space<vmem>>, %arg7: memref<2x32xf32, #tpu.memory_space<vmem>>, %arg8: memref<2x4xf32, #tpu.memory_space<vmem>>, %arg9: memref<2x4xf32, #tpu.memory_space<vmem>>, %arg10: memref<2x4x32xf32, #tpu.memory_space<vmem>>) attributes {dimension_semantics = [#tpu.dimension_semantics<arbitrary>], iteration_bounds = array<i64: 1>, scalar_prefetch = 0 : i64, scratch_operands = 3 : i64, tpu.core_type = #tpu.core_type<tc>, window_params = [{pipeline_mode = #tpu.pipeline_mode<synchronous>, transform_indices = @transform_0, window_bounds = array<i64: 2, 4, 32>}, {transform_indices = @transform_1, window_bounds = array<i64: 2, 9, 32>}, {transform_indices = @transform_2, window_bounds = array<i64: 2, 9, 32>}, {pipeline_mode = #tpu.pipeline_mode<synchronous>, transform_indices = @transform_3, window_bounds = array<i64: 4, 32>}, {pipeline_mode = #tpu.pipeline_mode<synchronous>, transform_indices = @transform_4, window_bounds = array<i64: 32, 32>}, {pipeline_mode = #tpu.pipeline_mode<synchronous>, transform_indices = @transform_5, window_bounds = array<i64: 1, 32>}, {pipeline_mode = #tpu.pipeline_mode<synchronous>, transform_indices = @transform_6, window_bounds = array<i64: 2, 32>}]} {
    %c0_i32 = arith.constant 0 : i32
    %0 = arith.cmpi eq, %arg0, %c0_i32 : i32
    %1 = arith.extui %0 : i1 to i32
    %c0_i32_0 = arith.constant 0 : i32
    %2 = arith.cmpi ne, %1, %c0_i32_0 : i32
    scf.if %2 {
      %cst_28 = arith.constant 0xFF800000 : f32
      %32 = vector.broadcast %cst_28 : f32 to vector<2x4xf32>
      %c0_29 = arith.constant 0 : index
      %c0_30 = arith.constant 0 : index
      %33 = vector.load %arg8[%c0_29, %c0_30] : memref<2x4xf32, #tpu.memory_space<vmem>>, vector<2x4xf32>
      tpu.vector_store %arg8[%c0_29, %c0_30], %32 {strides = array<i32>} : memref<2x4xf32, #tpu.memory_space<vmem>>, vector<2x4xf32>,
      %cst_31 = arith.constant 0.000000e+00 : f32
      %34 = vector.broadcast %cst_31 : f32 to vector<2x4xf32>
      %c0_32 = arith.constant 0 : index
      %c0_33 = arith.constant 0 : index
      %35 = vector.load %arg9[%c0_32, %c0_33] : memref<2x4xf32, #tpu.memory_space<vmem>>, vector<2x4xf32>
      tpu.vector_store %arg9[%c0_32, %c0_33], %34 {strides = array<i32>} : memref<2x4xf32, #tpu.memory_space<vmem>>, vector<2x4xf32>,
      %cst_34 = arith.constant 0.000000e+00 : f32
      %36 = vector.broadcast %cst_34 : f32 to vector<2x4x32xf32>
      %c0_35 = arith.constant 0 : index
      %c0_36 = arith.constant 0 : index
      %c0_37 = arith.constant 0 : index
      %37 = vector.load %arg10[%c0_35, %c0_36, %c0_37] : memref<2x4x32xf32, #tpu.memory_space<vmem>>, vector<2x4x32xf32>
      tpu.vector_store %arg10[%c0_35, %c0_36, %c0_37], %36 {strides = array<i32>} : memref<2x4x32xf32, #tpu.memory_space<vmem>>, vector<2x4x32xf32>,
    } else {
    }
    %c0 = arith.constant 0 : index
    %c0_1 = arith.constant 0 : index
    %c0_2 = arith.constant 0 : index
    %3 = vector.load %arg2[%c0, %c0_1, %c0_2] : memref<2x9x32xf32, #tpu.memory_space<vmem>>, vector<2x9x32xf32>
    %c0_3 = arith.constant 0 : index
    %c0_4 = arith.constant 0 : index
    %c0_5 = arith.constant 0 : index
    %4 = vector.load %arg3[%c0_3, %c0_4, %c0_5] : memref<2x9x32xf32, #tpu.memory_space<vmem>>, vector<2x9x32xf32>
    %c0_6 = arith.constant 0 : index
    %c0_7 = arith.constant 0 : index
    %c0_8 = arith.constant 0 : index
    %5 = vector.load %arg1[%c0_6, %c0_7, %c0_8] : memref<2x4x32xf32, #tpu.memory_space<vmem>>, vector<2x4x32xf32>
    "tpu.trace_start"() <{level = 10 : i32, message = "bhd,btd->bht"}> : () -> ()
    %cst = arith.constant dense<0.000000e+00> : vector<2x4x9xf32>
    %6 = tpu.matmul %5, %3, %cst {dimension_numbers = #tpu.dot_dimension_numbers<[2], [2], [1], [1], [0, 0, 0, 1, 1, 1], [0], [0]>} : vector<2x4x32xf32>, vector<2x9x32xf32>, vector<2x4x9xf32> -> vector<2x4x9xf32>
    "tpu.trace_stop"() : () -> ()
    %c0_9 = arith.constant 0 : index
    %c0_10 = arith.constant 0 : index
    %7 = vector.load %arg8[%c0_9, %c0_10] : memref<2x4xf32, #tpu.memory_space<vmem>>, vector<2x4xf32>
    %cst_11 = arith.constant dense<0xFF800000> : vector<2x4xf32>
    %8 = vector.multi_reduction <maximumf>, %6, %cst_11 [2] : vector<2x4x9xf32> to vector<2x4xf32>
    %9 = arith.maximumf %7, %8 : vector<2x4xf32>
    %10 = arith.subf %7, %9 : vector<2x4xf32>
    %11 = math.exp %10 : vector<2x4xf32>
    %12 = vector.shape_cast %9 : vector<2x4xf32> to vector<2x4x1xf32>
    %13 = vector.broadcast %12 : vector<2x4x1xf32> to vector<2x4x9xf32>
    %14 = arith.subf %6, %13 : vector<2x4x9xf32>
    %15 = math.exp %14 : vector<2x4x9xf32>
    %c0_12 = arith.constant 0 : index
    %c0_13 = arith.constant 0 : index
    %16 = vector.load %arg9[%c0_12, %c0_13] : memref<2x4xf32, #tpu.memory_space<vmem>>, vector<2x4xf32>
    %17 = arith.mulf %11, %16 : vector<2x4xf32>
    %cst_14 = arith.constant dense<0.000000e+00> : vector<2x4xf32>
    %18 = vector.multi_reduction <add>, %15, %cst_14 [2] : vector<2x4x9xf32> to vector<2x4xf32>
    %19 = arith.addf %17, %18 : vector<2x4xf32>
    %c0_15 = arith.constant 0 : index
    %c0_16 = arith.constant 0 : index
    %20 = vector.load %arg9[%c0_15, %c0_16] : memref<2x4xf32, #tpu.memory_space<vmem>>, vector<2x4xf32>
    tpu.vector_store %arg9[%c0_15, %c0_16], %19 {strides = array<i32>} : memref<2x4xf32, #tpu.memory_space<vmem>>, vector<2x4xf32>,
    %c0_17 = arith.constant 0 : index
    %c0_18 = arith.constant 0 : index
    %21 = vector.load %arg8[%c0_17, %c0_18] : memref<2x4xf32, #tpu.memory_space<vmem>>, vector<2x4xf32>
    tpu.vector_store %arg8[%c0_17, %c0_18], %9 {strides = array<i32>} : memref<2x4xf32, #tpu.memory_space<vmem>>, vector<2x4xf32>,
    "tpu.trace_start"() <{level = 10 : i32, message = "bht,btd->bhd"}> : () -> ()
    %cst_19 = arith.constant dense<0.000000e+00> : vector<2x4x32xf32>
    %22 = tpu.matmul %15, %4, %cst_19 {dimension_numbers = #tpu.dot_dimension_numbers<[2], [1], [1], [2], [0, 0, 0, 1, 1, 2], [0], [0]>} : vector<2x4x9xf32>, vector<2x9x32xf32>, vector<2x4x32xf32> -> vector<2x4x32xf32>
    "tpu.trace_stop"() : () -> ()
    %23 = vector.shape_cast %11 : vector<2x4xf32> to vector<2x4x1xf32>
    %c0_20 = arith.constant 0 : index
    %c0_21 = arith.constant 0 : index
    %c0_22 = arith.constant 0 : index
    %24 = vector.load %arg10[%c0_20, %c0_21, %c0_22] : memref<2x4x32xf32, #tpu.memory_space<vmem>>, vector<2x4x32xf32>
    %25 = vector.broadcast %23 : vector<2x4x1xf32> to vector<2x4x32xf32>
    %26 = arith.mulf %25, %24 : vector<2x4x32xf32>
    %27 = arith.addf %26, %22 : vector<2x4x32xf32>
    %c0_23 = arith.constant 0 : index
    %c0_24 = arith.constant 0 : index
    %c0_25 = arith.constant 0 : index
    %28 = vector.load %arg10[%c0_23, %c0_24, %c0_25] : memref<2x4x32xf32, #tpu.memory_space<vmem>>, vector<2x4x32xf32>
    tpu.vector_store %arg10[%c0_23, %c0_24, %c0_25], %27 {strides = array<i32>} : memref<2x4x32xf32, #tpu.memory_space<vmem>>, vector<2x4x32xf32>,
    %c0_i32_26 = arith.constant 0 : i32
    %29 = arith.cmpi eq, %arg0, %c0_i32_26 : i32
    %30 = arith.extui %29 : i1 to i32
    %c0_i32_27 = arith.constant 0 : i32
    %31 = arith.cmpi ne, %30, %c0_i32_27 : i32
    scf.if %31 {
      %c0_28 = arith.constant 0 : index
      %c0_29 = arith.constant 0 : index
      %c0_30 = arith.constant 0 : index
      %32 = vector.load %arg10[%c0_28, %c0_29, %c0_30] : memref<2x4x32xf32, #tpu.memory_space<vmem>>, vector<2x4x32xf32>
      %c0_31 = arith.constant 0 : index
      %c0_32 = arith.constant 0 : index
      %33 = vector.load %arg9[%c0_31, %c0_32] : memref<2x4xf32, #tpu.memory_space<vmem>>, vector<2x4xf32>
      %34 = vector.shape_cast %33 : vector<2x4xf32> to vector<2x4x1xf32>
      %35 = vector.broadcast %34 : vector<2x4x1xf32> to vector<2x4x32xf32>
      %36 = arith.divf %32, %35 : vector<2x4x32xf32>
      %c0_33 = arith.constant 0 : index
      %c0_34 = arith.constant 0 : index
      %37 = vector.load %arg4[%c0_33, %c0_34] : memref<4x32xf32, #tpu.memory_space<vmem>>, vector<4x32xf32>
      %38 = vector.shape_cast %37 : vector<4x32xf32> to vector<1x4x32xf32>
      %39 = vector.broadcast %38 : vector<1x4x32xf32> to vector<2x4x32xf32>
      %40 = arith.mulf %36, %39 : vector<2x4x32xf32>
      %cst_35 = arith.constant dense<0.000000e+00> : vector<2x32xf32>
      %41 = vector.multi_reduction <add>, %40, %cst_35 [1] : vector<2x4x32xf32> to vector<2x32xf32>
      %c0_36 = arith.constant 0 : index
      %c0_37 = arith.constant 0 : index
      %42 = vector.load %arg5[%c0_36, %c0_37] : memref<32x32xf32, #tpu.memory_space<vmem>>, vector<32x32xf32>
      %cst_38 = arith.constant dense<0.000000e+00> : vector<2x32xf32>
      %43 = tpu.matmul %41, %42, %cst_38 {dimension_numbers = #tpu.dot_dimension_numbers<[1], [0], [0], [1], [0, 0, 1, 1], [], []>} : vector<2x32xf32>, vector<32x32xf32>, vector<2x32xf32> -> vector<2x32xf32>
      %c0_39 = arith.constant 0 : index
      %c0_40 = arith.constant 0 : index
      %44 = vector.load %arg6[%c0_39, %c0_40] : memref<1x32xf32, #tpu.memory_space<vmem>>, vector<1x32xf32>
      %45 = vector.broadcast %44 : vector<1x32xf32> to vector<2x32xf32>
      %46 = arith.addf %43, %45 : vector<2x32xf32>
      %c0_41 = arith.constant 0 : index
      %c0_42 = arith.constant 0 : index
      %47 = vector.load %arg7[%c0_41, %c0_42] : memref<2x32xf32, #tpu.memory_space<vmem>>, vector<2x32xf32>
      tpu.vector_store %arg7[%c0_41, %c0_42], %46 {strides = array<i32>} : memref<2x32xf32, #tpu.memory_space<vmem>>, vector<2x32xf32>,
    } else {
    }
    return
  }
  func.func @transform_0(%arg0: i32) -> (i32, i32, i32) {
    %c0_i32 = arith.constant 0 : i32
    %c0_i32_0 = arith.constant 0 : i32
    %c0_i32_1 = arith.constant 0 : i32
    %c0_i32_2 = arith.constant 0 : i32
    return %c0_i32, %c0_i32_0, %c0_i32_1 : i32, i32, i32
  }
  func.func @transform_1(%arg0: i32) -> (i32, i32, i32) {
    %c0_i32 = arith.constant 0 : i32
    %c0_i32_0 = arith.constant 0 : i32
    %c0_i32_1 = arith.constant 0 : i32
    return %c0_i32, %arg0, %c0_i32_0 : i32, i32, i32
  }
  func.func @transform_2(%arg0: i32) -> (i32, i32, i32) {
    %c0_i32 = arith.constant 0 : i32
    %c0_i32_0 = arith.constant 0 : i32
    %c0_i32_1 = arith.constant 0 : i32
    return %c0_i32, %arg0, %c0_i32_0 : i32, i32, i32
  }
  func.func @transform_3(%arg0: i32) -> (i32, i32) {
    %c0_i32 = arith.constant 0 : i32
    %c0_i32_0 = arith.constant 0 : i32
    %c0_i32_1 = arith.constant 0 : i32
    return %c0_i32, %c0_i32_0 : i32, i32
  }
  func.func @transform_4(%arg0: i32) -> (i32, i32) {
    %c0_i32 = arith.constant 0 : i32
    %c0_i32_0 = arith.constant 0 : i32
    %c0_i32_1 = arith.constant 0 : i32
    return %c0_i32, %c0_i32_0 : i32, i32
  }
  func.func @transform_5(%arg0: i32) -> (i32, i32) {
    %c0_i32 = arith.constant 0 : i32
    %c0_i32_0 = arith.constant 0 : i32
    %c0_i32_1 = arith.constant 0 : i32
    return %c0_i32, %c0_i32_0 : i32, i32
  }
  func.func @transform_6(%arg0: i32) -> (i32, i32) {
    %c0_i32 = arith.constant 0 : i32
    %c0_i32_0 = arith.constant 0 : i32
    %c0_i32_1 = arith.constant 0 : i32
    return %c0_i32, %c0_i32_0 : i32, i32
  }
}

</mosaic_0001>

<bundles_post_ra>
// kernel: tpu_custom_call.1
= control target key start
LH: loop header
LB: loop body
LE: loop exit
PB: predicated region body
PF: predicated region fallthrough
CT: control target
= control target key end

     0   :  { %vm44_vm0 = vcmask 261120   ;;  %v724_v3 = vmov 0.0|0.0   ;;  %vm725_vm2 = vmmov 0   ;;  %v726_v7 = vmov 0.0   ;;  %s880_s0 = inlined_call_operand.vmem [shape: f32[2,4,32], index: 0, kind: input, shape index: {}]   ;;  %s881_s1 = inlined_call_operand.vmem [shape: f32[2,9,32], index: 1, kind: input, shape index: {}]   ;;  %s882_s2 = inlined_call_operand.vmem [shape: f32[2,9,32], index: 2, kind: input, shape index: {}]   ;;  %s883_s3 = inlined_call_operand.vmem [shape: f32[4,32], index: 3, kind: input, shape index: {}]   ;;  %s884_s4 = inlined_call_operand.vmem [shape: f32[32,32], index: 4, kind: input, shape index: {}]   ;;  %s885_s5 = inlined_call_operand.vmem [shape: f32[1,32], index: 5, kind: input, shape index: {}]   ;;  %s886_s6 = inlined_call_operand.hbm [shape: f32[2,32], index: 6, kind: output, shape index: {}]  }
   0x1   :  { %v34_v0 = vld [vmem:[%s881_s1] sm:$0xff]  ;;  %v35_v1 = vld [vmem:[%s881_s1 + $0x8] sm:$0x1]  ;;  %v36_v2 = vld [vmem:[%s881_s1 + $0x10] sm:$0xff]  ;;  %662 = vmatprep.subr.bf16.mxu0 %v724_v3  ;;  %666 = vmatprep.subr.bf16.mxu1 %v724_v3 }
   0x2   :  { %v663_v4 = vpack.c.bf16 %v35_v1, %v34_v0  ;;  %vm664_vm1 = vmpackc.low %vm44_vm0, %vm44_vm0  ;;  %v37_v5 = vld [vmem:[%s881_s1 + $0x18] sm:$0x1]  ;;  %627 = vmatprep.mubr.msk.f32.mxu0 %vm725_vm2, %v726_v7  ;;  %634 = vmatprep.mubr.msk.f32.mxu1 %vm725_vm2, %v726_v7 }
   0x3   :  { %v667_v6 = vpack.c.bf16 %v37_v5, %v36_v2 }
   0x4   :  { %11 = vsyncpa [#allocation6], 0  ;;  %665 = vmatpush3.bf16.xpose.msk.msra.mxu0 %vm664_vm1, %v663_v4  ;;  %v42_v8 = vld [vmem:[%s880_s0] sm:$0xf]  ;;  %v43_v9 = vld [vmem:[%s880_s0 + $0x4] sm:$0xf]  ;;  %v213_v17 = vlaneseq }
   0x5   :  { %669 = vmatpush3.bf16.xpose.msk.msra.mxu1 %vm664_vm1, %v667_v6  ;;  %678 = vmatprep.subr.bf16.mxu0 %v724_v3  ;;  %vm204_vm3 = vcmask 68608   ;;  %vm28_vm4 = vcmask 25600   ;;  %v727_v16 = vmov -inf   ;;  %vm223_vm5 = vcmask 1041409   ;;  %v38_v28 = vld [vmem:[%s882_s2] sm:$0xff]  ;;  %v40_v43 = vld [vmem:[%s882_s2 + $0x10] sm:$0xff] }
   0x6   :  { %670 = vmatprep.subr.bf16.mxu1 %v724_v3  ;;  %29 = vst.msk [vmem:[#allocation2] sm:$0x3] %vm28_vm4, %v727_v16  ;;  %30 = vst.msk [vmem:[#allocation3] sm:$0x3] %vm28_vm4, %v726_v7  ;;  %v214_v18 = vand.u32 127, %v213_v17  ;;  %v216_v19 = vshrl.u32 %v213_v17, 7 }
   0x7   :  { %v39_v29 = vld [vmem:[%s882_s2 + $0x8] sm:$0x1]  ;;  %vm278_vm6 = vcmask 1040384   ;;  %vm728_vm7 = vmmov 1   ;;  %v41_v44 = vld [vmem:[%s882_s2 + $0x18] sm:$0x1] }
   0x8   :  { %v804_v21 = vsub.s32 %v214_v18, %v216_v19  ;;  %v232_v26 = vsub.s32 0, %v216_v19  ;;  %v671_v31 = vpack.c.bf16 %v39_v29, %v38_v28  ;;  %vm815_vm8 = vmpackc.low %vm278_vm6, %vm728_vm7  ;;  %v239_v35 = vsub.s32 1, %v216_v19  ;;  %v492_v1 = vld [vmem:[%s884_s4] sm:$0xff]  ;;  %v493_v2 = vld [vmem:[%s884_s4 + $0x8] sm:$0xff]  ;;  %s729_s24 = smov [#allocation5]  }
   0x9   :  { %vm274_vm9 = vcmask 72704   ;;  %v675_v45 = vpack.c.bf16 %v41_v44, %v40_v43  ;;  %vm31_vm10 = vcmask 257024   ;;  %v494_v4 = vld [vmem:[%s884_s4 + $0x10] sm:$0xff]  ;;  %v679_v5 = vpack.c.bf16 %v493_v2, %v492_v1  ;;  %v495_v6 = vld [vmem:[%s884_s4 + $0x18] sm:$0xff]  ;;  %s586_s25 = sshll.u32 %s729_s24, 4  ;;  %s587_s25 = int_to_ptr.vmem [resolvable:$true] %s586_s25 }
   0xa   :  { %32 = vst.msk [vmem:[#allocation4] sm:$0xf] %vm31_vm10, %v726_v7  ;;  %33 = vst.msk [vmem:[#allocation4 + $0x4] sm:$0xf] %vm31_vm10, %v726_v7  ;;  %vm578_vm11 = vcmask 254976   ;;  %s700_s26 = scalar_lea.vmem %s587_s25, 32  ;;  %p705_p1 = scmp.lt.s32.totalorder %s587_s25, %s587_s25 }
   0xb   :  { %628 = vmatmul.mubr.msk.f32.vlgmr.msra.gmra.mrb[0].mxu0 %vm44_vm0, %v42_v8  ;;  %p701_p0 = scmp.ne.s32.totalorder %s587_s25, %s700_s26  ;;  %p706_p2 = scmp.lt.s32.totalorder %s700_s26, %s700_s26 }
   0xc   :  { %635 = vmatmul.mubr.msk.f32.vlgmr.msra.gmra.mrb[0].mxu1 %vm44_vm0, %v43_v9  ;;  %659 = vmatprep.mubr.msk.f32.mxu0 %vm725_vm2, %v726_v7 }
   0xd   :  { %641 = vmatprep.mubr.msk.f32.mxu1 %vm725_vm2, %v726_v7  ;;  %v203_v24 = vld [vmem:[#allocation2] sm:$0x3]  ;;  %673 = vmatpush3.bf16.msk.msra.mxu1 %vm815_vm8, %v671_v31  ;;  %v250_v55 = vld [vmem:[#allocation3] sm:$0x3]  ;;  %p707_p3 = por %p706_p2, %p705_p1 }
   0xe   :  { %674 = vmatprep.subr.bf16.mxu1 %v724_v3  ;;  %680 = vmatpush3.bf16.msra.mxu0 %v679_v5 }
   0xf   :  { %681 = vmatprep.subr.bf16.mxu0 %v724_v3  ;;  %p708_p4 = pnand %p707_p3, %p701_p0 }
  0x11   :  { %v442_v9 = vld [vmem:[#allocation4] sm:$0xf] }
  0xde   :  { %v120_v10 = vpop.f32.mrb[0].mxu0 }
  0xdf   :  { %v629_v11 = vpop.f32.mrb[1].mxu0  ;;  %v205_v12 = vsel %vm204_vm3, %v120_v10, -inf  ;;  %v199_v13 = vpop.f32.mrb[0].mxu1 }
  0xe0   :  { %206 = vmax.xlane.f32.xlu0 %v205_v12  ;;  %v636_v14 = vpop.f32.mrb[1].mxu1  ;;  %v208_v15 = vsel %vm204_vm3, %v199_v13, -inf  ;;  %v443_v11 = vld [vmem:[#allocation4 + $0x4] sm:$0xf] }
  0xe4   :  { %209 = vmax.xlane.f32.xlu0 %v208_v15 }
 0x16d   :  { %v207_v20 = vpop.xlane.xlu0 %206 }
 0x16e   :  { %v218_v23 = vrot.slane %v207_v20, %v804_v21 }
 0x171   :  { %v210_v22 = vpop.xlane.xlu0 %209 }
 0x172   :  { %v222_v25 = vrot.slane %v210_v22, %v804_v21 }
 0x174   :  { %v224_v27 = vsel %vm223_vm5, %v222_v25, %v218_v23  ;;  %v475_v23 = vld [vmem:[%s883_s3] sm:$0xf] }
 0x175   :  { %v226_v30 = vmax.f32 %v203_v24, %v224_v27 }
 0x177   :  { %v227_v33 = vsub.f32 %v203_v24, %v226_v30  ;;  %273 = vst.msk [vmem:[#allocation2] sm:$0x3] %vm28_vm4, %v226_v30  ;;  %v233_v34 = vrot.slane %v226_v30, %v232_v26  ;;  %v240_v36 = vrot.slane %v226_v30, %v239_v35 }
 0x179   :  { %235 = vbcast.lane.b32.xlu1 %v233_v34, 256  ;;  %v228_v49 = vmul.f32 1.442695, %v227_v33 }
 0x17d   :  { %242 = vbcast.lane.b32.xlu1 %v240_v36, 256 }
 0x1eb   :  { %v236_v37 = vpop.permute.xlu1 %235 }
 0x1ec   :  { %v244_v38 = vsub.f32 %v120_v10, %v236_v37 }
 0x1ee   :  { %v246_v39 = vmul.f32 1.442695, %v244_v38 }
 0x1ef   :  { %v243_v40 = vpop.permute.xlu1 %242 }
 0x1f0   :  { %690 = vpow2.f32 %v246_v39  ;;  %v245_v41 = vsub.f32 %v199_v13, %v243_v40 }
 0x1f2   :  { %v248_v42 = vmul.f32 1.442695, %v245_v41 }
 0x1f4   :  { %692 = vpow2.f32 %v248_v42 }
 0x1f5   :  { %694 = vpow2.f32 %v228_v49 }
 0x1fa   :  { %v691_v46 = vpop.eup %690 }
 0x1fb   :  { %642 = vmatmul.mubr.msk.f32.vlgmr.msra.gmra.mrb[2].mxu1 %vm274_vm9, %v691_v46  ;;  %v252_v47 = vsel %vm204_vm3, %v691_v46, 0.0 }
 0x1fc   :  { %677 = vmatpush3.bf16.msk.msra.mxu1 %vm815_vm8, %v675_v45  ;;  %253 = vadd.xlane.f32.xlu0 %v252_v47  ;;  %v604_v45 = vld [vmem:[%s885_s5] ss:$0 sm:$0xff] }
 0x1fd   :  { %648 = vmatprep.mubr.msk.f32.mxu1 %vm725_vm2, %v726_v7  ;;  %v682_v7 = vpack.c.bf16 %v495_v6, %v494_v4 }
 0x1fe   :  { %v693_v48 = vpop.eup %692 }
 0x1ff   :  { %649 = vmatmul.mubr.msk.f32.vlgmr.msra.gmra.mrb[4].mxu1 %vm274_vm9, %v693_v48  ;;  %v255_v50 = vsel %vm204_vm3, %v693_v48, 0.0  ;;  %v695_v51 = vpop.eup %694  ;;  %683 = vmatpush3.bf16.msra.mxu0 %v682_v7 }
 0x200   :  { %256 = vadd.xlane.f32.xlu1 %v255_v50  ;;  %v431_v52 = vrot.slane %v695_v51, %v232_v26  ;;  %v438_v53 = vrot.slane %v695_v51, %v239_v35  ;;  %v251_v59 = vmul.f32 %v695_v51, %v250_v55 }
 0x212   :  { %433 = vbcast.lane.b32.xlu0 %v431_v52, 256 }
 0x216   :  { %440 = vbcast.lane.b32.xlu0 %v438_v53, 256 }
 0x289   :  { %v254_v54 = vpop.xlane.xlu0 %253 }
 0x28a   :  { %v263_v57 = vrot.slane %v254_v54, %v804_v21 }
 0x28d   :  { %v257_v56 = vpop.xlane.xlu1 %256  ;;  %v434_v8 = vpop.permute.xlu0 %433 }
 0x28e   :  { %v267_v58 = vrot.slane %v257_v56, %v804_v21  ;;  %v444_v10 = vmul.f32 %v442_v9, %v434_v8 }
 0x290   :  { %v268_v60 = vsel %vm223_vm5, %v267_v58, %v263_v57 }
 0x291   :  { %v270_v61 = vadd.f32 %v268_v60, %v251_v59  ;;  %v441_v12 = vpop.permute.xlu0 %440 }
 0x292   :  { %v445_v16 = vmul.f32 %v443_v11, %v441_v12 }
 0x293   :  { %272 = vst.msk [vmem:[#allocation3] sm:$0x3] %vm28_vm4, %v270_v61 }
 0x29a   :  { %v456_v62 = vld [vmem:[#allocation3] sm:$0x3] }
 0x29b   :  { %v460_v63 = vrot.slane %v456_v62, %v232_v26  ;;  %v467_v0 = vrot.slane %v456_v62, %v239_v35 }
 0x29d   :  { %462 = vbcast.lane.b32.xlu0 %v460_v63, 256 }
 0x2a1   :  { %469 = vbcast.lane.b32.xlu0 %v467_v0, 256 }
 0x2ce   :  { %v348_v13 = vpop.f32.mrb[2].mxu1 }
 0x2cf   :  { %v446_v14 = vadd.f32 %v444_v10, %v348_v13  ;;  %v643_v15 = vpop.f32.mrb[3].mxu1 }
 0x2d1   :  { %449 = vst.msk [vmem:[#allocation4] sm:$0xf] %vm31_vm10, %v446_v14 }
 0x2d2   :  { %v424_v17 = vpop.f32.mrb[4].mxu1 }
 0x2d3   :  { %v447_v18 = vadd.f32 %v445_v16, %v424_v17  ;;  %v650_v19 = vpop.f32.mrb[5].mxu1 }
 0x2d5   :  { %450 = vst.msk [vmem:[#allocation4 + $0x4] sm:$0xf] %vm31_vm10, %v447_v18 }
 0x2d8   :  { %v454_v22 = vld [vmem:[#allocation4] sm:$0xf] }
 0x2dc   :  { %v455_v27 = vld [vmem:[#allocation4 + $0x4] sm:$0xf] }
 0x30f   :  { %v463_v20 = vpop.permute.xlu0 %462 }
 0x310   :  { %696 = vrcp.f32 %v463_v20 }
 0x313   :  { %v470_v3 = vpop.permute.xlu0 %469 }
 0x314   :  { %698 = vrcp.f32 %v470_v3 }
 0x31a   :  { %v697_v21 = vpop.eup %696 }
 0x31b   :  { %v472_v24 = vmul.f32 %v697_v21, %v454_v22 }
 0x31d   :  { %v476_v25 = vmul.f32 %v475_v23, %v472_v24 }
 0x31e   :  { %v699_v26 = vpop.eup %698 }
 0x31f   :  { %v474_v28 = vmul.f32 %v699_v26, %v455_v27  ;;  %v478_v29 = vsel %vm31_vm10, %v476_v25, 0.0 }
 0x320   :  { %v479_v30 = vrot.slane %v478_v29, 4 }
 0x321   :  { %v477_v31 = vmul.f32 %v475_v23, %v474_v28 }
 0x322   :  { %v480_v32 = vadd.f32 %v479_v30, %v478_v29 }
 0x323   :  { %v485_v33 = vsel %vm31_vm10, %v477_v31, 0.0 }
 0x324   :  { %v486_v34 = vrot.slane %v485_v33, 4  ;;  %v481_v35 = vrot.slane %v480_v32, 2 }
 0x326   :  { %v482_v36 = vadd.f32 %v481_v35, %v480_v32  ;;  %v487_v37 = vadd.f32 %v486_v34, %v485_v33 }
 0x328   :  { %v488_v38 = vrot.slane %v487_v37, 2  ;;  %v483_v39 = vrot.slane %v482_v36, 1 }
 0x32a   :  { %v489_v40 = vadd.f32 %v488_v38, %v487_v37  ;;  %v484_v42 = vadd.f32 %v483_v39, %v482_v36 }
 0x32c   :  { %v490_v41 = vrot.slane %v489_v40, 1 }
 0x32e   :  { %v491_v43 = vadd.f32 %v490_v41, %v489_v40 }
 0x330   :  { %v505_v44 = vsel %vm223_vm5, %v491_v43, %v484_v42 }
 0x331   :  { %660 = vmatmul.mubr.msk.f32.vlgmr.msra.gmra.mrb[2].mxu0 %vm44_vm0, %v505_v44 }
 0x404   :  { %v574_v46 = vpop.f32.mrb[2].mxu0 }
 0x405   :  { %v575_v47 = vadd.f32 %v604_v45, %v574_v46  ;;  %v661_v48 = vpop.f32.mrb[3].mxu0 }
 0x407   :  { %579 = vst.msk [vmem:[#allocation5] sm:$0x3] %vm578_vm11, %v575_v47 }
 0x408   :  { %711 = shalt.err (!%p708_p4)
}
 0x409   :  { %s712_s29 = scalar_lea.hbm %s886_s6, 32 }
 0x40a   :  { %p713_p5 = scmp.ne.s32.totalorder %s886_s6, %s712_s29  ;;  %p716_p6 = scmp.lt.u32.totalorder %s712_s29, %s886_s6 }
 0x40c   :  { %p718_p7 = pnand %p716_p6, %p713_p5 }
 0x40e   :  { %721 = shalt.err (!%p718_p7)
}
 0x40f   :  { %589 = dma.vmem_to_hbm [thread:$0]  %s587_s25, 32, %s886_s6, [#allocation6]  }
 0x410   :  { %722 = dma.done.wait [#allocation6], 32  }
 0x411   :  { %723 = vsyncadd [#allocation6], 4294967264 }
 0x412   :  { %593 = vsyncpa [#allocation6], 1 }

// kernel: tpu_custom_call.1
= control target key start
LH: loop header
LB: loop body
LE: loop exit
PB: predicated region body
PF: predicated region fallthrough
CT: control target
= control target key end

     0   :  { %vm44_vm0 = vcmask 261120   ;;  %v724_v3 = vmov 0.0|0.0   ;;  %vm725_vm2 = vmmov 0   ;;  %v726_v7 = vmov 0.0   ;;  %s880_s0 = inlined_call_operand.vmem [shape: f32[2,4,32], index: 0, kind: input, shape index: {}]   ;;  %s881_s1 = inlined_call_operand.vmem [shape: f32[2,9,32], index: 1, kind: input, shape index: {}]   ;;  %s882_s2 = inlined_call_operand.vmem [shape: f32[2,9,32], index: 2, kind: input, shape index: {}]   ;;  %s883_s3 = inlined_call_operand.vmem [shape: f32[4,32], index: 3, kind: input, shape index: {}]   ;;  %s884_s4 = inlined_call_operand.vmem [shape: f32[32,32], index: 4, kind: input, shape index: {}]   ;;  %s885_s5 = inlined_call_operand.vmem [shape: f32[1,32], index: 5, kind: input, shape index: {}]   ;;  %s886_s6 = inlined_call_operand.hbm [shape: f32[2,32], index: 6, kind: output, shape index: {}]  }
   0x1   :  { %v34_v0 = vld [vmem:[%s881_s1] sm:$0xff]  ;;  %v35_v1 = vld [vmem:[%s881_s1 + $0x8] sm:$0x1]  ;;  %v36_v2 = vld [vmem:[%s881_s1 + $0x10] sm:$0xff]  ;;  %662 = vmatprep.subr.bf16.mxu0 %v724_v3  ;;  %666 = vmatprep.subr.bf16.mxu1 %v724_v3 }
   0x2   :  { %v663_v4 = vpack.c.bf16 %v35_v1, %v34_v0  ;;  %vm664_vm1 = vmpackc.low %vm44_vm0, %vm44_vm0  ;;  %v37_v5 = vld [vmem:[%s881_s1 + $0x18] sm:$0x1]  ;;  %627 = vmatprep.mubr.msk.f32.mxu0 %vm725_vm2, %v726_v7  ;;  %634 = vmatprep.mubr.msk.f32.mxu1 %vm725_vm2, %v726_v7 }
   0x3   :  { %v667_v6 = vpack.c.bf16 %v37_v5, %v36_v2 }
   0x4   :  { %11 = vsyncpa [#allocation6], 0  ;;  %665 = vmatpush3.bf16.xpose.msk.msra.mxu0 %vm664_vm1, %v663_v4  ;;  %v42_v8 = vld [vmem:[%s880_s0] sm:$0xf]  ;;  %v43_v9 = vld [vmem:[%s880_s0 + $0x4] sm:$0xf]  ;;  %v213_v17 = vlaneseq }
   0x5   :  { %669 = vmatpush3.bf16.xpose.msk.msra.mxu1 %vm664_vm1, %v667_v6  ;;  %678 = vmatprep.subr.bf16.mxu0 %v724_v3  ;;  %vm204_vm3 = vcmask 68608   ;;  %vm28_vm4 = vcmask 25600   ;;  %v727_v16 = vmov -inf   ;;  %vm223_vm5 = vcmask 1041409   ;;  %v38_v28 = vld [vmem:[%s882_s2] sm:$0xff]  ;;  %v40_v43 = vld [vmem:[%s882_s2 + $0x10] sm:$0xff] }
   0x6   :  { %670 = vmatprep.subr.bf16.mxu1 %v724_v3  ;;  %29 = vst.msk [vmem:[#allocation2] sm:$0x3] %vm28_vm4, %v727_v16  ;;  %30 = vst.msk [vmem:[#allocation3] sm:$0x3] %vm28_vm4, %v726_v7  ;;  %v214_v18 = vand.u32 127, %v213_v17  ;;  %v216_v19 = vshrl.u32 %v213_v17, 7 }
   0x7   :  { %v39_v29 = vld [vmem:[%s882_s2 + $0x8] sm:$0x1]  ;;  %vm278_vm6 = vcmask 1040384   ;;  %vm728_vm7 = vmmov 1   ;;  %v41_v44 = vld [vmem:[%s882_s2 + $0x18] sm:$0x1] }
   0x8   :  { %v804_v21 = vsub.s32 %v214_v18, %v216_v19  ;;  %v232_v26 = vsub.s32 0, %v216_v19  ;;  %v671_v31 = vpack.c.bf16 %v39_v29, %v38_v28  ;;  %vm815_vm8 = vmpackc.low %vm278_vm6, %vm728_vm7  ;;  %v239_v35 = vsub.s32 1, %v216_v19  ;;  %v492_v1 = vld [vmem:[%s884_s4] sm:$0xff]  ;;  %v493_v2 = vld [vmem:[%s884_s4 + $0x8] sm:$0xff]  ;;  %s729_s24 = smov [#allocation5]  }
   0x9   :  { %vm274_vm9 = vcmask 72704   ;;  %v675_v45 = vpack.c.bf16 %v41_v44, %v40_v43  ;;  %vm31_vm10 = vcmask 257024   ;;  %v494_v4 = vld [vmem:[%s884_s4 + $0x10] sm:$0xff]  ;;  %v679_v5 = vpack.c.bf16 %v493_v2, %v492_v1  ;;  %v495_v6 = vld [vmem:[%s884_s4 + $0x18] sm:$0xff]  ;;  %s586_s25 = sshll.u32 %s729_s24, 4  ;;  %s587_s25 = int_to_ptr.vmem [resolvable:$true] %s586_s25 }
   0xa   :  { %32 = vst.msk [vmem:[#allocation4] sm:$0xf] %vm31_vm10, %v726_v7  ;;  %33 = vst.msk [vmem:[#allocation4 + $0x4] sm:$0xf] %vm31_vm10, %v726_v7  ;;  %vm578_vm11 = vcmask 254976   ;;  %s700_s26 = scalar_lea.vmem %s587_s25, 32  ;;  %p705_p1 = scmp.lt.s32.totalorder %s587_s25, %s587_s25 }
   0xb   :  { %628 = vmatmul.mubr.msk.f32.vlgmr.msra.gmra.mrb[0].mxu0 %vm44_vm0, %v42_v8  ;;  %p701_p0 = scmp.ne.s32.totalorder %s587_s25, %s700_s26  ;;  %p706_p2 = scmp.lt.s32.totalorder %s700_s26, %s700_s26 }
   0xc   :  { %635 = vmatmul.mubr.msk.f32.vlgmr.msra.gmra.mrb[0].mxu1 %vm44_vm0, %v43_v9  ;;  %659 = vmatprep.mubr.msk.f32.mxu0 %vm725_vm2, %v726_v7 }
   0xd   :  { %641 = vmatprep.mubr.msk.f32.mxu1 %vm725_vm2, %v726_v7  ;;  %v203_v24 = vld [vmem:[#allocation2] sm:$0x3]  ;;  %673 = vmatpush3.bf16.msk.msra.mxu1 %vm815_vm8, %v671_v31  ;;  %v250_v55 = vld [vmem:[#allocation3] sm:$0x3]  ;;  %p707_p3 = por %p706_p2, %p705_p1 }
   0xe   :  { %674 = vmatprep.subr.bf16.mxu1 %v724_v3  ;;  %680 = vmatpush3.bf16.msra.mxu0 %v679_v5 }
   0xf   :  { %681 = vmatprep.subr.bf16.mxu0 %v724_v3  ;;  %p708_p4 = pnand %p707_p3, %p701_p0 }
  0x11   :  { %v442_v9 = vld [vmem:[#allocation4] sm:$0xf] }
  0xde   :  { %v120_v10 = vpop.f32.mrb[0].mxu0 }
  0xdf   :  { %v629_v11 = vpop.f32.mrb[1].mxu0  ;;  %v205_v12 = vsel %vm204_vm3, %v120_v10, -inf  ;;  %v199_v13 = vpop.f32.mrb[0].mxu1 }
  0xe0   :  { %206 = vmax.xlane.f32.xlu0 %v205_v12  ;;  %v636_v14 = vpop.f32.mrb[1].mxu1  ;;  %v208_v15 = vsel %vm204_vm3, %v199_v13, -inf  ;;  %v443_v11 = vld [vmem:[#allocation4 + $0x4] sm:$0xf] }
  0xe4   :  { %209 = vmax.xlane.f32.xlu0 %v208_v15 }
 0x16d   :  { %v207_v20 = vpop.xlane.xlu0 %206 }
 0x16e   :  { %v218_v23 = vrot.slane %v207_v20, %v804_v21 }
 0x171   :  { %v210_v22 = vpop.xlane.xlu0 %209 }
 0x172   :  { %v222_v25 = vrot.slane %v210_v22, %v804_v21 }
 0x174   :  { %v224_v27 = vsel %vm223_vm5, %v222_v25, %v218_v23  ;;  %v475_v23 = vld [vmem:[%s883_s3] sm:$0xf] }
 0x175   :  { %v226_v30 = vmax.f32 %v203_v24, %v224_v27 }
 0x177   :  { %v227_v33 = vsub.f32 %v203_v24, %v226_v30  ;;  %273 = vst.msk [vmem:[#allocation2] sm:$0x3] %vm28_vm4, %v226_v30  ;;  %v233_v34 = vrot.slane %v226_v30, %v232_v26  ;;  %v240_v36 = vrot.slane %v226_v30, %v239_v35 }
 0x179   :  { %235 = vbcast.lane.b32.xlu1 %v233_v34, 256  ;;  %v228_v49 = vmul.f32 1.442695, %v227_v33 }
 0x17d   :  { %242 = vbcast.lane.b32.xlu1 %v240_v36, 256 }
 0x1eb   :  { %v236_v37 = vpop.permute.xlu1 %235 }
 0x1ec   :  { %v244_v38 = vsub.f32 %v120_v10, %v236_v37 }
 0x1ee   :  { %v246_v39 = vmul.f32 1.442695, %v244_v38 }
 0x1ef   :  { %v243_v40 = vpop.permute.xlu1 %242 }
 0x1f0   :  { %690 = vpow2.f32 %v246_v39  ;;  %v245_v41 = vsub.f32 %v199_v13, %v243_v40 }
 0x1f2   :  { %v248_v42 = vmul.f32 1.442695, %v245_v41 }
 0x1f4   :  { %692 = vpow2.f32 %v248_v42 }
 0x1f5   :  { %694 = vpow2.f32 %v228_v49 }
 0x1fa   :  { %v691_v46 = vpop.eup %690 }
 0x1fb   :  { %642 = vmatmul.mubr.msk.f32.vlgmr.msra.gmra.mrb[2].mxu1 %vm274_vm9, %v691_v46  ;;  %v252_v47 = vsel %vm204_vm3, %v691_v46, 0.0 }
 0x1fc   :  { %677 = vmatpush3.bf16.msk.msra.mxu1 %vm815_vm8, %v675_v45  ;;  %253 = vadd.xlane.f32.xlu0 %v252_v47  ;;  %v604_v45 = vld [vmem:[%s885_s5] ss:$0 sm:$0xff] }
 0x1fd   :  { %648 = vmatprep.mubr.msk.f32.mxu1 %vm725_vm2, %v726_v7  ;;  %v682_v7 = vpack.c.bf16 %v495_v6, %v494_v4 }
 0x1fe   :  { %v693_v48 = vpop.eup %692 }
 0x1ff   :  { %649 = vmatmul.mubr.msk.f32.vlgmr.msra.gmra.mrb[4].mxu1 %vm274_vm9, %v693_v48  ;;  %v255_v50 = vsel %vm204_vm3, %v693_v48, 0.0  ;;  %v695_v51 = vpop.eup %694  ;;  %683 = vmatpush3.bf16.msra.mxu0 %v682_v7 }
 0x200   :  { %256 = vadd.xlane.f32.xlu1 %v255_v50  ;;  %v431_v52 = vrot.slane %v695_v51, %v232_v26  ;;  %v438_v53 = vrot.slane %v695_v51, %v239_v35  ;;  %v251_v59 = vmul.f32 %v695_v51, %v250_v55 }
 0x212   :  { %433 = vbcast.lane.b32.xlu0 %v431_v52, 256 }
 0x216   :  { %440 = vbcast.lane.b32.xlu0 %v438_v53, 256 }
 0x289   :  { %v254_v54 = vpop.xlane.xlu0 %253 }
 0x28a   :  { %v263_v57 = vrot.slane %v254_v54, %v804_v21 }
 0x28d   :  { %v257_v56 = vpop.xlane.xlu1 %256  ;;  %v434_v8 = vpop.permute.xlu0 %433 }
 0x28e   :  { %v267_v58 = vrot.slane %v257_v56, %v804_v21  ;;  %v444_v10 = vmul.f32 %v442_v9, %v434_v8 }
 0x290   :  { %v268_v60 = vsel %vm223_vm5, %v267_v58, %v263_v57 }
 0x291   :  { %v270_v61 = vadd.f32 %v268_v60, %v251_v59  ;;  %v441_v12 = vpop.permute.xlu0 %440 }
 0x292   :  { %v445_v16 = vmul.f32 %v443_v11, %v441_v12 }
 0x293   :  { %272 = vst.msk [vmem:[#allocation3] sm:$0x3] %vm28_vm4, %v270_v61 }
 0x29a   :  { %v456_v62 = vld [vmem:[#allocation3] sm:$0x3] }
 0x29b   :  { %v460_v63 = vrot.slane %v456_v62, %v232_v26  ;;  %v467_v0 = vrot.slane %v456_v62, %v239_v35 }
 0x29d   :  { %462 = vbcast.lane.b32.xlu0 %v460_v63, 256 }
 0x2a1   :  { %469 = vbcast.lane.b32.xlu0 %v467_v0, 256 }
 0x2ce   :  { %v348_v13 = vpop.f32.mrb[2].mxu1 }
 0x2cf   :  { %v446_v14 = vadd.f32 %v444_v10, %v348_v13  ;;  %v643_v15 = vpop.f32.mrb[3].mxu1 }
 0x2d1   :  { %449 = vst.msk [vmem:[#allocation4] sm:$0xf] %vm31_vm10, %v446_v14 }
 0x2d2   :  { %v424_v17 = vpop.f32.mrb[4].mxu1 }
 0x2d3   :  { %v447_v18 = vadd.f32 %v445_v16, %v424_v17  ;;  %v650_v19 = vpop.f32.mrb[5].mxu1 }
 0x2d5   :  { %450 = vst.msk [vmem:[#allocation4 + $0x4] sm:$0xf] %vm31_vm10, %v447_v18 }
 0x2d8   :  { %v454_v22 = vld [vmem:[#allocation4] sm:$0xf] }
 0x2dc   :  { %v455_v27 = vld [vmem:[#allocation4 + $0x4] sm:$0xf] }
 0x30f   :  { %v463_v20 = vpop.permute.xlu0 %462 }
 0x310   :  { %696 = vrcp.f32 %v463_v20 }
 0x313   :  { %v470_v3 = vpop.permute.xlu0 %469 }
 0x314   :  { %698 = vrcp.f32 %v470_v3 }
 0x31a   :  { %v697_v21 = vpop.eup %696 }
 0x31b   :  { %v472_v24 = vmul.f32 %v697_v21, %v454_v22 }
 0x31d   :  { %v476_v25 = vmul.f32 %v475_v23, %v472_v24 }
 0x31e   :  { %v699_v26 = vpop.eup %698 }
 0x31f   :  { %v474_v28 = vmul.f32 %v699_v26, %v455_v27  ;;  %v478_v29 = vsel %vm31_vm10, %v476_v25, 0.0 }
 0x320   :  { %v479_v30 = vrot.slane %v478_v29, 4 }
 0x321   :  { %v477_v31 = vmul.f32 %v475_v23, %v474_v28 }
 0x322   :  { %v480_v32 = vadd.f32 %v479_v30, %v478_v29 }
 0x323   :  { %v485_v33 = vsel %vm31_vm10, %v477_v31, 0.0 }
 0x324   :  { %v486_v34 = vrot.slane %v485_v33, 4  ;;  %v481_v35 = vrot.slane %v480_v32, 2 }
 0x326   :  { %v482_v36 = vadd.f32 %v481_v35, %v480_v32  ;;  %v487_v37 = vadd.f32 %v486_v34, %v485_v33 }
 0x328   :  { %v488_v38 = vrot.slane %v487_v37, 2  ;;  %v483_v39 = vrot.slane %v482_v36, 1 }
 0x32a   :  { %v489_v40 = vadd.f32 %v488_v38, %v487_v37  ;;  %v484_v42 = vadd.f32 %v483_v39, %v482_v36 }
 0x32c   :  { %v490_v41 = vrot.slane %v489_v40, 1 }
 0x32e   :  { %v491_v43 = vadd.f32 %v490_v41, %v489_v40 }
 0x330   :  { %v505_v44 = vsel %vm223_vm5, %v491_v43, %v484_v42 }
 0x331   :  { %660 = vmatmul.mubr.msk.f32.vlgmr.msra.gmra.mrb[2].mxu0 %vm44_vm0, %v505_v44 }
 0x404   :  { %v574_v46 = vpop.f32.mrb[2].mxu0 }
 0x405   :  { %v575_v47 = vadd.f32 %v604_v45, %v574_v46  ;;  %v661_v48 = vpop.f32.mrb[3].mxu0 }
 0x407   :  { %579 = vst.msk [vmem:[#allocation5] sm:$0x3] %vm578_vm11, %v575_v47 }
 0x408   :  { %711 = shalt.err (!%p708_p4)
}
 0x409   :  { %s712_s29 = scalar_lea.hbm %s886_s6, 32 }
 0x40a   :  { %p713_p5 = scmp.ne.s32.totalorder %s886_s6, %s712_s29  ;;  %p716_p6 = scmp.lt.u32.totalorder %s712_s29, %s886_s6 }
 0x40c   :  { %p718_p7 = pnand %p716_p6, %p713_p5 }
 0x40e   :  { %721 = shalt.err (!%p718_p7)
}
 0x40f   :  { %589 = dma.vmem_to_hbm [thread:$0]  %s587_s25, 32, %s886_s6, [#allocation6]  }
 0x410   :  { %722 = dma.done.wait [#allocation6], 32  }
 0x411   :  { %723 = vsyncadd [#allocation6], 4294967264 }
 0x412   :  { %593 = vsyncpa [#allocation6], 1 }

</bundles_post_ra>
